<compile_context>
chip_gen: v6e
topology: v6e:2x2x1
jax: 0.10.0
libtpu: 0.0.40
codegen_flags: <defaults>
</compile_context>

<pallas_src>
import math
import numpy as np
import jax
import jax.numpy as jnp
from jax import lax
from jax.experimental import pallas as pl
from jax.experimental.pallas import tpu as pltpu


def _make_sdpa_kernel(inv_temperature, with_mask):
    """Build the kernel body (mask handling resolved at trace time)."""

    def kernel(*refs):
        if with_mask:
            q_ref, k_ref, v_ref, mask_ref, out_ref, attn_ref = refs
        else:
            q_ref, k_ref, v_ref, out_ref, attn_ref = refs
            mask_ref = None

        q = q_ref[0]          # (TQ, D)   native dtype
        k = k_ref[0]          # (Lk, D)
        v = v_ref[0]          # (Lk, Dv)

        # q @ k^T: contract the last dims directly (no explicit transpose on the XLU).
        scores = lax.dot_general(
            q, k, (((1,), (1,)), ((), ())),
            preferred_element_type=jnp.float32,
            precision=lax.Precision.HIGHEST,
        ) * inv_temperature                                    # (TQ, Lk) f32

        if with_mask:
            scores = jnp.where(mask_ref[0] != 0, -jnp.inf, scores)

        # Numerically stable row softmax over the key axis (f32).
        m = jnp.max(scores, axis=-1, keepdims=True)
        e = jnp.exp(scores - m)
        s = jnp.sum(e, axis=-1, keepdims=True)
        attn = e / s                                           # (TQ, Lk) f32

        attn_ref[0] = attn.astype(attn_ref.dtype)
        out_ref[0] = jnp.dot(
            attn.astype(v.dtype), v,
            preferred_element_type=jnp.float32,
            precision=lax.Precision.HIGHEST,
        ).astype(out_ref.dtype)                                # (TQ, Dv)

    return kernel


def _choose_q_tile(lq, max_tile=512):
    """Largest query tile <= max_tile that evenly divides Lq (multiple of 8)."""
    if lq <= max_tile:
        return lq
    start = max_tile - (max_tile % 8)
    for t in range(start, 7, -8):
        if lq % t == 0:
            return t
    return lq  # TODO(synk): ragged Lq not a multiple of 8 falls back to one big tile.


def scaled_dot_product_attention(q, k, v, temperature, mask=None):
    """JAX/Pallas equivalent of ScaledDotProductAttention.forward.

    Returns (output[B, Lq, Dv], attn[B, Lq, Lk]).
    """
    q = jnp.asarray(q)
    k = jnp.asarray(k)
    v = jnp.asarray(v)
    B, Lq, D = q.shape
    _, Lk, _ = k.shape
    Dv = v.shape[-1]

    tq = _choose_q_tile(Lq)
    n_q = Lq // tq
    inv_temp = float(1.0 / float(temperature))
    with_mask = mask is not None

    in_specs = [
        pl.BlockSpec((1, tq, D), lambda b, m: (b, m, 0)),    # q: one tile per step
        pl.BlockSpec((1, Lk, D), lambda b, m: (b, 0, 0)),    # k: resident per batch
        pl.BlockSpec((1, Lk, Dv), lambda b, m: (b, 0, 0)),   # v: resident per batch
    ]
    args = [q, k, v]
    if with_mask:
        # torch masked_fill broadcasts the mask; do the broadcast in the wrapper
        # and ship it as int32 (layout-safe), selecting -inf in-kernel.
        mask_i = jnp.broadcast_to(jnp.asarray(mask), (B, Lq, Lk)).astype(jnp.int32)
        in_specs.append(pl.BlockSpec((1, tq, Lk), lambda b, m: (b, m, 0)))
        args.append(mask_i)

    out, attn = pl.pallas_call(
        _make_sdpa_kernel(inv_temp, with_mask),
        out_shape=(
            jax.ShapeDtypeStruct((B, Lq, Dv), q.dtype),
            jax.ShapeDtypeStruct((B, Lq, Lk), q.dtype),
        ),
        grid_spec=pltpu.PrefetchScalarGridSpec(
            num_scalar_prefetch=0,
            grid=(B, n_q),  # query-tile axis innermost -> k/v DMA'd once per batch
            in_specs=in_specs,
            out_specs=[
                pl.BlockSpec((1, tq, Dv), lambda b, m: (b, m, 0)),
                pl.BlockSpec((1, tq, Lk), lambda b, m: (b, m, 0)),
            ],
        ),
        compiler_params=pltpu.CompilerParams(
            dimension_semantics=("parallel", "parallel")),
    )(*args)

    return out, attn


if __name__ == "__main__":
    key = jax.random.PRNGKey(0)
    B, Lq, Lk, D, Dv = 2, 8, 8, 32, 32
    temperature = math.sqrt(D)

    kq, kk, kv = jax.random.split(key, 3)
    q = jax.random.normal(kq, (B, Lq, D), dtype=jnp.float32)
    k = jax.random.normal(kk, (B, Lk, D), dtype=jnp.float32)
    v = jax.random.normal(kv, (B, Lk, Dv), dtype=jnp.float32)

    # Deterministic key-padding style mask (True = masked); no fully-masked rows.
    valid = np.array([6, 8], dtype=np.int32)
    mask_np = np.zeros((B, Lq, Lk), dtype=bool)
    for b in range(B):
        mask_np[b, :, valid[b]:] = True
    mask = jnp.asarray(mask_np)

    def ref_sdpa(qn, kn, vn, mask_n=None):
        attn_r = np.matmul(qn, np.swapaxes(kn, 1, 2)) / temperature
        if mask_n is not None:
            attn_r = np.where(mask_n, -np.inf, attn_r)
        mx = attn_r.max(axis=2, keepdims=True)
        e = np.exp(attn_r - mx)
        attn_r = e / e.sum(axis=2, keepdims=True)
        out_r = np.matmul(attn_r, vn)
        return out_r, attn_r

    qn, kn, vn = np.asarray(q), np.asarray(k), np.asarray(v)

    # Masked path.
    out, attn = scaled_dot_product_attention(q, k, v, temperature, mask=mask)
    out = jax.block_until_ready(out)
    attn = jax.block_until_ready(attn)
    ref_out, ref_attn = ref_sdpa(qn, kn, vn, mask_np)
    np.testing.assert_allclose(np.asarray(attn), ref_attn, atol=1e-4, rtol=1e-4)
    np.testing.assert_allclose(np.asarray(out), ref_out, atol=1e-4, rtol=1e-4)

    # Unmasked path (mask=None branch of the module).
    out2, attn2 = scaled_dot_product_attention(q, k, v, temperature)
    out2 = jax.block_until_ready(out2)
    attn2 = jax.block_until_ready(attn2)
    ref_out2, ref_attn2 = ref_sdpa(qn, kn, vn, None)
    np.testing.assert_allclose(np.asarray(attn2), ref_attn2, atol=1e-4, rtol=1e-4)
    np.testing.assert_allclose(np.asarray(out2), ref_out2, atol=1e-4, rtol=1e-4)

    print("KERNEL_OK")
</pallas_src>

<mosaic_0001>
module attributes {stable_mosaic.version = 11 : i64} {
  func.func @kernel(%arg0: i32, %arg1: i32, %arg2: memref<1x8x32xf32, #tpu.memory_space<vmem>>, %arg3: memref<1x8x32xf32, #tpu.memory_space<vmem>>, %arg4: memref<1x8x32xf32, #tpu.memory_space<vmem>>, %arg5: memref<1x8x8xi32, #tpu.memory_space<vmem>>, %arg6: memref<1x8x32xf32, #tpu.memory_space<vmem>>, %arg7: memref<1x8x8xf32, #tpu.memory_space<vmem>>) attributes {dimension_semantics = [#tpu.dimension_semantics<parallel>, #tpu.dimension_semantics<parallel>], iteration_bounds = array<i64: 2, 1>, scalar_prefetch = 0 : i64, scratch_operands = 0 : i64, tpu.core_type = #tpu.core_type<tc>, window_params = [{transform_indices = @transform_0, window_bounds = array<i64: 1, 8, 32>}, {transform_indices = @transform_1, window_bounds = array<i64: 1, 8, 32>}, {transform_indices = @transform_2, window_bounds = array<i64: 1, 8, 32>}, {transform_indices = @transform_3, window_bounds = array<i64: 1, 8, 8>}, {transform_indices = @transform_4, window_bounds = array<i64: 1, 8, 32>}, {transform_indices = @transform_5, window_bounds = array<i64: 1, 8, 8>}]} {
    %c0 = arith.constant 0 : index
    %c0_0 = arith.constant 0 : index
    %c0_1 = arith.constant 0 : index
    %0 = vector.load %arg2[%c0, %c0_0, %c0_1] : memref<1x8x32xf32, #tpu.memory_space<vmem>>, vector<1x8x32xf32>
    %1 = vector.shape_cast %0 : vector<1x8x32xf32> to vector<8x32xf32>
    %c0_2 = arith.constant 0 : index
    %c0_3 = arith.constant 0 : index
    %c0_4 = arith.constant 0 : index
    %2 = vector.load %arg3[%c0_2, %c0_3, %c0_4] : memref<1x8x32xf32, #tpu.memory_space<vmem>>, vector<1x8x32xf32>
    %3 = vector.shape_cast %2 : vector<1x8x32xf32> to vector<8x32xf32>
    %c0_5 = arith.constant 0 : index
    %c0_6 = arith.constant 0 : index
    %c0_7 = arith.constant 0 : index
    %4 = vector.load %arg4[%c0_5, %c0_6, %c0_7] : memref<1x8x32xf32, #tpu.memory_space<vmem>>, vector<1x8x32xf32>
    %5 = vector.shape_cast %4 : vector<1x8x32xf32> to vector<8x32xf32>
    %cst = arith.constant dense<0.000000e+00> : vector<8x8xf32>
    %6 = tpu.matmul %1, %3, %cst {dimension_numbers = #tpu.dot_dimension_numbers<[1], [1], [0], [0], [0, 0, 1, 0], [], []>, precision = #tpu.contract_precision<fp32>} : vector<8x32xf32>, vector<8x32xf32>, vector<8x8xf32> -> vector<8x8xf32>
    %cst_8 = arith.constant 0.176776692 : f32
    %7 = vector.broadcast %cst_8 : f32 to vector<8x8xf32>
    %8 = arith.mulf %6, %7 : vector<8x8xf32>
    %c0_9 = arith.constant 0 : index
    %c0_10 = arith.constant 0 : index
    %c0_11 = arith.constant 0 : index
    %9 = vector.load %arg5[%c0_9, %c0_10, %c0_11] : memref<1x8x8xi32, #tpu.memory_space<vmem>>, vector<1x8x8xi32>
    %10 = vector.shape_cast %9 : vector<1x8x8xi32> to vector<8x8xi32>
    %c0_i32 = arith.constant 0 : i32
    %11 = vector.broadcast %c0_i32 : i32 to vector<8x8xi32>
    %12 = arith.cmpi ne, %10, %11 : vector<8x8xi32>
    %cst_12 = arith.constant 0xFF800000 : f32
    %13 = vector.broadcast %cst_12 : f32 to vector<8x8xf32>
    %14 = arith.select %12, %13, %8 : vector<8x8xi1>, vector<8x8xf32>
    %cst_13 = arith.constant dense<0xFF800000> : vector<8xf32>
    %15 = vector.multi_reduction <maximumf>, %14, %cst_13 [1] : vector<8x8xf32> to vector<8xf32>
    %16 = vector.shape_cast %15 : vector<8xf32> to vector<8x1xf32>
    %17 = vector.broadcast %16 : vector<8x1xf32> to vector<8x8xf32>
    %18 = arith.subf %14, %17 : vector<8x8xf32>
    %19 = math.exp %18 : vector<8x8xf32>
    %cst_14 = arith.constant dense<0.000000e+00> : vector<8xf32>
    %20 = vector.multi_reduction <add>, %19, %cst_14 [1] : vector<8x8xf32> to vector<8xf32>
    %21 = vector.shape_cast %20 : vector<8xf32> to vector<8x1xf32>
    %22 = vector.broadcast %21 : vector<8x1xf32> to vector<8x8xf32>
    %23 = arith.divf %19, %22 : vector<8x8xf32>
    %c0_15 = arith.constant 0 : index
    %c0_16 = arith.constant 0 : index
    %c0_17 = arith.constant 0 : index
    %24 = vector.load %arg7[%c0_15, %c0_16, %c0_17] : memref<1x8x8xf32, #tpu.memory_space<vmem>>, vector<1x8x8xf32>
    %25 = vector.shape_cast %24 : vector<1x8x8xf32> to vector<8x8xf32>
    %26 = vector.shape_cast %23 : vector<8x8xf32> to vector<1x8x8xf32>
    tpu.vector_store %arg7[%c0_15, %c0_16, %c0_17], %26 {strides = array<i32>} : memref<1x8x8xf32, #tpu.memory_space<vmem>>, vector<1x8x8xf32>,
    %cst_18 = arith.constant dense<0.000000e+00> : vector<8x32xf32>
    %27 = tpu.matmul %23, %5, %cst_18 {dimension_numbers = #tpu.dot_dimension_numbers<[1], [0], [0], [1], [0, 0, 1, 1], [], []>, precision = #tpu.contract_precision<fp32>} : vector<8x8xf32>, vector<8x32xf32>, vector<8x32xf32> -> vector<8x32xf32>
    %c0_19 = arith.constant 0 : index
    %c0_20 = arith.constant 0 : index
    %c0_21 = arith.constant 0 : index
    %28 = vector.load %arg6[%c0_19, %c0_20, %c0_21] : memref<1x8x32xf32, #tpu.memory_space<vmem>>, vector<1x8x32xf32>
    %29 = vector.shape_cast %28 : vector<1x8x32xf32> to vector<8x32xf32>
    %30 = vector.shape_cast %27 : vector<8x32xf32> to vector<1x8x32xf32>
    tpu.vector_store %arg6[%c0_19, %c0_20, %c0_21], %30 {strides = array<i32>} : memref<1x8x32xf32, #tpu.memory_space<vmem>>, vector<1x8x32xf32>,
    return
  }
  func.func @transform_0(%arg0: i32, %arg1: i32) -> (i32, i32, i32) {
    %c0_i32 = arith.constant 0 : i32
    %c0_i32_0 = arith.constant 0 : i32
    return %arg0, %arg1, %c0_i32 : i32, i32, i32
  }
  func.func @transform_1(%arg0: i32, %arg1: i32) -> (i32, i32, i32) {
    %c0_i32 = arith.constant 0 : i32
    %c0_i32_0 = arith.constant 0 : i32
    %c0_i32_1 = arith.constant 0 : i32
    return %arg0, %c0_i32, %c0_i32_0 : i32, i32, i32
  }
  func.func @transform_2(%arg0: i32, %arg1: i32) -> (i32, i32, i32) {
    %c0_i32 = arith.constant 0 : i32
    %c0_i32_0 = arith.constant 0 : i32
    %c0_i32_1 = arith.constant 0 : i32
    return %arg0, %c0_i32, %c0_i32_0 : i32, i32, i32
  }
  func.func @transform_3(%arg0: i32, %arg1: i32) -> (i32, i32, i32) {
    %c0_i32 = arith.constant 0 : i32
    %c0_i32_0 = arith.constant 0 : i32
    return %arg0, %arg1, %c0_i32 : i32, i32, i32
  }
  func.func @transform_4(%arg0: i32, %arg1: i32) -> (i32, i32, i32) {
    %c0_i32 = arith.constant 0 : i32
    %c0_i32_0 = arith.constant 0 : i32
    return %arg0, %arg1, %c0_i32 : i32, i32, i32
  }
  func.func @transform_5(%arg0: i32, %arg1: i32) -> (i32, i32, i32) {
    %c0_i32 = arith.constant 0 : i32
    %c0_i32_0 = arith.constant 0 : i32
    return %arg0, %arg1, %c0_i32 : i32, i32, i32
  }
}

</mosaic_0001>

<bundles_post_ra>
// kernel: tpu_custom_call.1
= control target key start
LH: loop header
LB: loop body
LE: loop exit
PB: predicated region body
PF: predicated region fallthrough
CT: control target
= control target key end

     0   :  { %s2268_s0 = inlined_call_operand.hbm [shape: f32[2,8,32], index: 0, kind: input, shape index: {}]   ;;  %s2269_s1 = inlined_call_operand.hbm [shape: f32[2,8,32], index: 1, kind: input, shape index: {}]   ;;  %s2270_s2 = inlined_call_operand.hbm [shape: f32[2,8,32], index: 2, kind: input, shape index: {}]   ;;  %s2271_s3 = inlined_call_operand.hbm [shape: s32[2,8,8], index: 3, kind: input, shape index: {}]   ;;  %s2272_s4 = inlined_call_operand.hbm [shape: f32[2,8,32], index: 4, kind: output, shape index: {0}]   ;;  %s2273_s5 = inlined_call_operand.hbm [shape: f32[2,8,8], index: 5, kind: output, shape index: {1}]  }
   0x1   :  { %2279 = sst [smem:[#allocation23_spill]] %s2269_s1 }
   0x2   :  { %11 = vsyncpa [#allocation3], 0 }
   0x3   :  { %13 = vsyncpa [#allocation3 + $0x1], 0 }
   0x4   :  { %14 = vsyncpa [#allocation6], 0 }
   0x5   :  { %16 = vsyncpa [#allocation6 + $0x1], 0 }
   0x6   :  { %17 = vsyncpa [#allocation9], 0 }
   0x7   :  { %19 = vsyncpa [#allocation9 + $0x1], 0 }
   0x8   :  { %20 = vsyncpa [#allocation4], 0 }
   0x9   :  { %22 = vsyncpa [#allocation4 + $0x1], 0 }
   0xa   :  { %23 = vsyncpa [#allocation12], 0 }
   0xb   :  { %25 = vsyncpa [#allocation12 + $0x1], 0  ;;  %s1985_s18 = smov 0   ;;  %s1987_s19 = smov 0  }
   0xc   :  { %s1989_s20 = smov 0   ;;  %s1991_s21 = smov 0  }
   0xd   :  { %s1993_s22 = smov 0   ;;  %s1995_s23 = smov 0  }
   0xe LB: > { %2280 = sst [smem:[#allocation18_spill]] %s1933_s20  ;;  %s2016_s24 = sadd.s32 4294967295, %s1945_s23   ;;  %s1945_s23 = sphi %s1995_s23, %s31_s23   ;;  %s1941_s22 = sphi %s1993_s22, %s2297_s22   ;;  %s1937_s21 = sphi %s1991_s21, %s2296_s21   ;;  %s1933_s20 = sphi %s1989_s20, %s2295_s20   ;;  %s1929_s19 = sphi %s1987_s19, %s2299_s19   ;;  %s1925_s18 = sphi %s1985_s18, %s2298_s18  }
   0xf   : > { %2281 = sst [smem:[#allocation19_spill]] %s1941_s22  ;;  %s1519_s25 = sadd.s32 4294967294, %s1945_s23  }
  0x10   : > { %2282 = sst [smem:[#allocation20_spill]] %s1945_s23  ;;  %s43_s26 = sadd.s32 1, %s1941_s22 }
  0x11   : > { %s52_s27 = sadd.s32 1, %s1933_s20  ;;  %p45_p0 = scmp.ge.s32.totalorder %s43_s26, 2 }
  0x12   : > { %p59_p1 = scmp.ne.s32.totalorder %s1933_s20, %s1929_s19  ;;  %p60_p2 = scmp.eq.s32.totalorder %s1945_s23, 0 }
  0x13   : > { %p65_p3 = scmp.ne.s32.totalorder %s1929_s19, %s1925_s18  ;;  %s2301_s26 = smov (%p45_p0, %s43_s26), 0 }
  0x14   : > { %2283 = sst [smem:[#allocation21_spill]] %s2301_s26  ;;  %p2028_p4 = por %p60_p2, %p59_p1 }
  0x15   : > { %p66_p5 = scmp.eq.s32.totalorder %s2016_s24, 0  ;;  %s47_s29 = ssub.s32 %s1941_s22, %s2301_s26 }
  0x16   : > { %p171_p6 = scmp.eq.s32.totalorder %s2016_s24, 1  ;;  %p50_p7 = scmp.eq.s32.totalorder %s47_s29, 0 }
  0x17   : > { %p2036_p8 = por %p66_p5, %p65_p3  ;;  %p177_p10 = scmp.eq.s32.totalorder %s1519_s25, 1 }
  0x18   : > { %p2040_p9 = por %p171_p6, %p59_p1  ;;  %p1659_p13 = scmp.lt.s32.totalorder %s1945_s23, 2 }
  0x19   : > { %s2045_s7 = scalar_select %p50_p7, %s1933_s20, %s52_s27  }
  0x1a   : > { %p2047_p11 = por %p177_p10, %p65_p3  ;;  %s2054_s9 = sand.u32 1, %s1933_s20  }
  0x1b   : > { %2287 = sst [smem:[#allocation22_spill]] %s2045_s7  ;;  %s2057_s10 = sshll.u32 %s2054_s9, 3 }
  0x1c   : > { %s2060_s11 = sshll.u32 %s1941_s22, 7  ;;  %p2064_p0 = pnand %p1659_p13, %p2028_p4 }
  0x1d   : > { %s244_s13 = sand.u32 1, %s1945_s23   ;;  %s2290_s1 = sld [smem:[#allocation23_spill]] }
  0x1e   : > { %s248_s17 = scalar_lea.vmem [#allocation5], %s2057_s10  ;;  %p1530_p1 = scmp.ge.s32.totalorder %s1945_s23, 1 }
  0x1f   : > { %s255_s25 = sshll.u32 %s248_s17, 4  ;;  %p297_p2 = scmp.lt.s32.totalorder %s1945_s23, 3  ;;  %s256_s25 = int_to_ptr.vmem [resolvable:$true] %s255_s25 }
  0x20   : > { %s2076_s27 = scalar_lea.sflag [#allocation6], %s244_s13  ;;  %p1717_p3 = pneg %p2064_p0 }
  0x21   : > { %s1728_s28 = scalar_lea.vmem %s256_s25, 128  ;;  %s1947_s29 = smov [#allocation5]  }
  0x22   : > { %p1729_p4 = scmp.ne.s32.totalorder %s256_s25, %s1728_s28  ;;  %s1733_s26 = sshll.u32 %s1947_s29, 4  ;;  %s1734_s26 = int_to_ptr.vmem [resolvable:$false] %s1733_s26 }
  0x23   : > { %s253_s16 = scalar_lea.hbm %s2290_s1, %s2060_s11  ;;  %s1735_s14 = scalar_lea.vmem %s1734_s26, 256 }
  0x24   : > { %p1731_p5 = pnand %p1729_p4, %p1717_p3  ;;  %p1736_p7 = scmp.lt.s32.totalorder %s256_s25, %s1734_s26 }
  0x25   : > { %p1737_p10 = scmp.lt.s32.totalorder %s1735_s14, %s1728_s28 }
  0x26   : > { %p1732_p6 = pneg %p1731_p5 }
  0x27   : > { %p1738_p13 = por %p1737_p10, %p1736_p7 }
  0x29   : > { %p1739_p12 = pnand %p1738_p13, %p1732_p6 }
  0x2b   : > { %1742 = shalt.err (!%p1739_p12)
}
  0x2c   : > { %1645 = dma.hbm_to_vmem [thread:$0]  (!%p2064_p0), %s253_s16, 128, %s256_s25, %s2076_s27  }
  0x2d   : > { %p2090_p4 = pnand %p1530_p1, %p297_p2  ;;  %s235_s17 = scalar_lea.hbm %s2268_s0, %s2060_s11 }
  0x2e   : > { %s229_s28 = scalar_lea.vmem [#allocation2], %s2057_s10  ;;  %s271_s22 = scalar_lea.hbm %s2270_s2, %s2060_s11 }
  0x2f   : > { %s237_s29 = sshll.u32 %s229_s28, 4  ;;  %s226_s7 = scalar_lea.sflag [#allocation3], %s2054_s9  ;;  %s238_s29 = int_to_ptr.vmem [resolvable:$true] %s237_s29 }
  0x30   : > { %s1756_s20 = scalar_lea.vmem %s238_s29, 128  ;;  %s1948_s16 = smov [#allocation2]  }
  0x31   : > { %p1757_p12 = scmp.ne.s32.totalorder %s238_s29, %s1756_s20  ;;  %s1761_s25 = sshll.u32 %s1948_s16, 4  ;;  %s1762_s25 = int_to_ptr.vmem [resolvable:$false] %s1761_s25 }
  0x32   : > { %s1763_s23 = scalar_lea.vmem %s1762_s25, 256  ;;  %p1764_p5 = scmp.lt.s32.totalorder %s238_s29, %s1762_s25 }
  0x33   : > { %p1759_p1 = pnand %p1757_p12, %p1717_p3  ;;  %p1765_p6 = scmp.lt.s32.totalorder %s1763_s23, %s1756_s20 }
  0x35   : > { %p1760_p2 = pneg %p1759_p1  ;;  %p1766_p7 = por %p1765_p6, %p1764_p5 }
  0x37   : > { %p1767_p10 = pnand %p1766_p7, %p1760_p2 }
  0x39   : > { %1770 = shalt.err (!%p1767_p10)
}
  0x3a   : > { %1642 = dma.hbm_to_vmem [thread:$0]  (!%p2064_p0), %s235_s17, 128, %s238_s29, %s226_s7  }
  0x3b   : > { %s266_s1 = scalar_lea.vmem [#allocation7], %s2057_s10  ;;  %s1949_s28 = smov [#allocation7]  }
  0x3c   : > { %s273_s26 = sshll.u32 %s266_s1, 4  ;;  %s1789_s14 = sshll.u32 %s1949_s28, 4  ;;  %s274_s26 = int_to_ptr.vmem [resolvable:$true] %s273_s26  ;;  %s1790_s14 = int_to_ptr.vmem [resolvable:$false] %s1789_s14 }
  0x3d   : > { %s1784_s15 = scalar_lea.vmem %s274_s26, 128  ;;  %s1791_s20 = scalar_lea.vmem %s1790_s14, 256 }
  0x3e   : > { %p1785_p13 = scmp.ne.s32.totalorder %s274_s26, %s1784_s15  ;;  %p1792_p2 = scmp.lt.s32.totalorder %s274_s26, %s1790_s14 }
  0x3f   : > { %p1793_p5 = scmp.lt.s32.totalorder %s1791_s20, %s1784_s15 }
  0x40   : > { %p1787_p12 = pnand %p1785_p13, %p1717_p3 }
  0x41   : > { %p1794_p6 = por %p1793_p5, %p1792_p2 }
  0x42   : > { %p1788_p1 = pneg %p1787_p12 }
  0x44   : > { %p1795_p7 = pnand %p1794_p6, %p1788_p1 }
  0x46   : > { %1798 = shalt.err (!%p1795_p7)
}
  0x47   : > { %1648 = dma.hbm_to_vmem [thread:$0]  (!%p2064_p0), %s271_s22, 128, %s274_s26, %s2076_s27  }
  0x48   : > { %s290_s16 = scalar_lea.hbm %s2271_s3, %s2060_s11  ;;  %s284_s25 = scalar_lea.vmem [#allocation8], %s2057_s10 }
  0x49   : > { %s292_s1 = sshll.u32 %s284_s25, 4  ;;  %s281_s15 = scalar_lea.sflag [#allocation9], %s2054_s9  ;;  %s293_s1 = int_to_ptr.vmem [resolvable:$true] %s292_s1 }
  0x4a   : > { %s1812_s28 = scalar_lea.vmem %s293_s1, 128  ;;  %s1950_s14 = smov [#allocation8]  }
  0x4b   : > { %p1813_p10 = scmp.ne.s32.totalorder %s293_s1, %s1812_s28  ;;  %s1817_s20 = sshll.u32 %s1950_s14, 4  ;;  %s1818_s20 = int_to_ptr.vmem [resolvable:$false] %s1817_s20 }
  0x4c   : > { %s1819_s23 = scalar_lea.vmem %s1818_s20, 256  ;;  %p1820_p1 = scmp.lt.s32.totalorder %s293_s1, %s1818_s20 }
  0x4d   : > { %p1815_p13 = pnand %p1813_p10, %p1717_p3  ;;  %p1821_p2 = scmp.lt.s32.totalorder %s1819_s23, %s1812_s28 }
  0x4f   : > { %p1816_p12 = pneg %p1815_p13  ;;  %p1822_p5 = por %p1821_p2, %p1820_p1 }
  0x51   : > { %p1823_p6 = pnand %p1822_p5, %p1816_p12 }
  0x53   : > { %1826 = shalt.err (!%p1823_p6)
}
  0x54   : > { %1651 = dma.hbm_to_vmem [thread:$0]  (!%p2064_p0), %s290_s16, 128, %s293_s1, %s281_s15  }
  0x55   : > { %301 = sbr.rel (%p2090_p4) target bundleno = 859 (0x35b), region = 36  ;;  %s2135_s22 = sand.u32 (!%p2090_p4), 1, %s1929_s19  }
  0x56   : > { %s2138_s9 = sshll.u32 (!%p2090_p4), %s2135_s22, 3  ;;  %s304_s10 = scalar_lea.sflag (!%p2090_p4), [#allocation3], %s2135_s22 }
  0x57   : > { %s307_s11 = scalar_lea.vmem (!%p2090_p4), [#allocation2], %s2138_s9 }
  0x5a   : > { %1904 = dma.done.wait (%p2036_p8), %s304_s10, 128  }
  0x5b   : > { %1906 = vsyncadd (%p2036_p8), %s304_s10, 4294967168  ;;  %s312_s12 = sand.u32 1, %s2016_s24   ;;  %s316_s13 = scalar_lea.vmem [#allocation5], %s2138_s9 }
  0x5c   : > { %s313_s27 = scalar_lea.sflag [#allocation6], %s312_s12 }
  0x5d   : > { %1908 = dma.done.wait (%p2036_p8), %s313_s27, 256  }
  0x5e   : > { %1910 = vsyncadd (%p2036_p8), %s313_s27, 4294967040  ;;  %s325_s26 = scalar_lea.vmem [#allocation7], %s2138_s9  ;;  %s331_s7 = scalar_lea.sflag [#allocation9], %s2135_s22 }
  0x5f   : > { %s334_s17 = scalar_lea.vmem [#allocation8], %s2138_s9 }
  0x60   : > { %1912 = dma.done.wait (%p2036_p8), %s331_s7, 128  }
  0x61   : > { %1914 = vsyncadd (%p2036_p8), %s331_s7, 4294967168  ;;  %v1951_v0 = vmov 0.0   ;;  %vm1952_vm0 = vmmov 0   ;;  %vm384_vm1 = vcmask 261120   ;;  %v382_v1 = vld [vmem:[%s316_s13] sm:$0xff]  ;;  %v381_v2 = vld [vmem:[%s307_s11] sm:$0xff] }
  0x62   : > { %1567 = vmatprep.subr.mxu0 %v1951_v0  ;;  %1569 = vmatprep.mubr.msk.f32.mxu0 %vm1952_vm0, %v1951_v0  ;;  %v389_v3 = vsel %vm384_vm1, %v382_v1, 0  ;;  %v386_v4 = vsel %vm384_vm1, %v381_v2, 0  ;;  %v838_v29 = vld [vmem:[%s334_s17] sm:$0xff]  ;;  %vm841_vm3 = vcmask 64512   ;;  %v383_v41 = vld [vmem:[%s325_s26] sm:$0xff]  ;;  %s380_s24 = scalar_lea.vmem [#allocation11], %s2138_s9 }
  0x63   : > { %1572 = vmatprep.subr.mxu1 %v1951_v0  ;;  %1574 = vmatprep.mubr.msk.f32.mxu1 %vm1952_vm0, %v1951_v0  ;;  %v422_v5 = vand.u32 4294901760, %v389_v3  ;;  %v457_v6 = vand.u32 4294901760, %v386_v4  ;;  %vm839_vm2 = vcmp.ne.s32.totalorder %v838_v29, 0  ;;  %v888_v42 = vand.u32 4294901760, %v383_v41  ;;  %s1539_s30 = sshll.u32 %s1937_s21, 7  ;;  %s1338_s1 = sshll.u32 %s380_s24, 4  ;;  %s1339_s1 = int_to_ptr.vmem [resolvable:$true] %s1338_s1 }
  0x64   : > { %s1336_s25 = scalar_lea.hbm %s2273_s5, %s1539_s30  ;;  %s1310_s15 = scalar_lea.sflag [#allocation12], %s2135_s22 }
  0x65   : > { %1568 = vmatpush3.xpose.msra.mxu0 %v422_v5  ;;  %v458_v7 = vsub.f32 %v386_v4, %v457_v6  ;;  %v499_v8 = vsub.f32 %v389_v3, %v422_v5  ;;  %v965_v43 = vsub.f32 %v383_v41, %v888_v42  ;;  %s1827_s28 = scalar_lea.vmem %s1339_s1, 128  ;;  %s1953_s14 = smov [#allocation11]  }
  0x66   : > { %1577 = vmatprep.subr.mxu0 %v1951_v0  ;;  %p1828_p8 = scmp.ne.s32.totalorder %s1339_s1, %s1827_s28  ;;  %s1831_s20 = sshll.u32 %s1953_s14, 4  ;;  %s1832_s20 = int_to_ptr.vmem [resolvable:$false] %s1831_s20 }
  0x67   : > { %v459_v9 = vand.u32 4294901760, %v458_v7  ;;  %v500_v10 = vand.u32 4294901760, %v499_v8  ;;  %v966_v44 = vand.u32 4294901760, %v965_v43  ;;  %s1833_s23 = scalar_lea.vmem %s1832_s20, 256  ;;  %p1834_p4 = scmp.lt.s32.totalorder %s1339_s1, %s1832_s20 }
  0x68   : > { %p1829_p0 = pnand %p1828_p8, %p2040_p9  ;;  %p1835_p7 = scmp.lt.s32.totalorder %s1833_s23, %s1827_s28 }
  0x69   : > { %v460_v11 = vsub.f32 %v458_v7, %v459_v9  ;;  %v501_v12 = vsub.f32 %v499_v8, %v500_v10  ;;  %v967_v45 = vsub.f32 %v965_v43, %v966_v44 }
  0x6a   : > { %p1830_p3 = pneg %p1829_p0  ;;  %p1836_p10 = por %p1835_p7, %p1834_p4 }
  0x6b   : > { %v461_v13 = vand.u32 4294901760, %v460_v11  ;;  %v502_v14 = vand.u32 4294901760, %v501_v12  ;;  %v968_v46 = vand.u32 4294901760, %v967_v45 }
  0x6c   : > { %p1837_p13 = pnand %p1836_p10, %p1830_p3 }
  0x6d   : > { %1570 = vmatmul.mubr.f32.vlgmr.msra.gmra.mxu0 %v461_v13  ;;  %1573 = vmatpush3.xpose.msra.mxu1 %v502_v14 }
  0x6e   : > { %1578 = vmatpush3.xpose.msra.mxu0 %v499_v8  ;;  %1579 = vmatprep.mubr.msk.f32.mxu0 %vm1952_vm0, %v1951_v0 }
  0x6f   : > { %1582 = vmatprep.subr.mxu1 %v1951_v0  ;;  %1587 = vmatprep.subr.mxu0 %v1951_v0 }
  0x70   : > { %1575 = vmatmul.mubr.f32.vlgmr.msra.gmra.mxu1 %v457_v6 }
  0x71   : > { %1580 = vmatmul.mubr.f32.vlgmr.msra.gmra.mxu0 %v458_v7  ;;  %1583 = vmatpush3.xpose.msra.mxu1 %v422_v5 }
  0x72   : > { %1588 = vmatpush3.xpose.msra.mxu0 %v500_v10  ;;  %1584 = vmatprep.mubr.msk.f32.mxu1 %vm1952_vm0, %v1951_v0 }
  0x73   : > { %1589 = vmatprep.mubr.msk.f32.mxu0 %vm1952_vm0, %v1951_v0  ;;  %1592 = vmatprep.subr.mxu1 %v1951_v0 }
  0x74   : > { %1585 = vmatmul.mubr.f32.vlgmr.msra.gmra.mxu1 %v459_v9  ;;  %1597 = vmatprep.subr.mxu0 %v1951_v0 }
  0x75   : > { %1590 = vmatmul.mubr.f32.vlgmr.msra.gmra.mxu0 %v457_v6  ;;  %1593 = vmatpush3.xpose.msra.mxu1 %v422_v5 }
  0x76   : > { %1594 = vmatprep.mubr.msk.f32.mxu1 %vm1952_vm0, %v1951_v0  ;;  %1602 = vmatprep.subr.mxu1 %v1951_v0 }
  0x77   : > { %1599 = vmatprep.mubr.msk.f32.mxu0 %vm1952_vm0, %v1951_v0  ;;  %1598 = vmatpush3.msra.mxu0 %v888_v42 }
  0x78   : > { %1595 = vmatmul.mubr.f32.vlgmr.msra.gmra.mxu1 %v457_v6  ;;  %1607 = vmatprep.subr.mxu0 %v1951_v0 }
  0x79   : > { %1604 = vmatprep.mubr.msk.f32.mxu1 %vm1952_vm0, %v1951_v0  ;;  %1603 = vmatpush3.msra.mxu1 %v968_v46 }
  0x7a   : > { %1612 = vmatprep.subr.mxu1 %v1951_v0 }
 0x12d   : > { %v463_v15 = vpop.f32.mrf.mxu0 }
 0x12f   : > { %v1571_v16 = vpop.f32.mrf.mxu0 }
 0x130   : > { %v539_v17 = vpop.f32.mrf.mxu1 }
 0x131   : > { %v540_v18 = vadd.f32 %v539_v17, %v463_v15  ;;  %v613_v19 = vpop.f32.mrf.mxu0 }
 0x132   : > { %v1576_v20 = vpop.f32.mrf.mxu1 }
 0x133   : > { %v614_v21 = vadd.f32 %v613_v19, %v540_v18  ;;  %v1581_v22 = vpop.f32.mrf.mxu0 }
 0x134   : > { %v687_v23 = vpop.f32.mrf.mxu1 }
 0x135   : > { %v688_v24 = vadd.f32 %v687_v23, %v614_v21  ;;  %v761_v25 = vpop.f32.mrf.mxu0 }
 0x136   : > { %v1586_v26 = vpop.f32.mrf.mxu1 }
 0x137   : > { %v762_v27 = vadd.f32 %v761_v25, %v688_v24  ;;  %v1591_v28 = vpop.f32.mrf.mxu0 }
 0x138   : > { %v833_v30 = vpop.f32.mrf.mxu1 }
 0x139   : > { %v834_v31 = vadd.f32 %v833_v30, %v762_v27 }
 0x13a   : > { %v1596_v32 = vpop.f32.mrf.mxu1 }
 0x13b   : > { %v837_v33 = vmul.f32 0.17677669, %v834_v31 }
 0x13d   : > { %v840_v34 = vsel %vm839_vm2, -inf, %v837_v33 }
 0x13e   : > { %v842_v35 = vsel %vm841_vm3, %v840_v34, -inf }
 0x13f   : > { %843 = vmax.xlane.f32.xlu0 %v842_v35 }
 0x1c8   : > { %v844_v36 = vpop.xlane.xlu0 %843 }
 0x1c9   : > { %v845_v37 = vsub.f32 %v840_v34, %v844_v36 }
 0x1cb   : > { %v846_v38 = vmul.f32 1.442695, %v845_v37 }
 0x1cd   : > { %1711 = vpow2.f32 %v846_v38 }
 0x1da   : > { %v1712_v39 = vpop.eup %1711 }
 0x1db   : > { %v848_v40 = vsel %vm841_vm3, %v1712_v39, 0.0 }
 0x1dc   : > { %849 = vadd.xlane.f32.xlu0 %v848_v40 }
 0x265   : > { %v850_v47 = vpop.xlane.xlu0 %849 }
 0x266   : > { %1713 = vrcp.f32 %v850_v47 }
 0x273   : > { %v1714_v48 = vpop.eup %1713 }
 0x274   : > { %v852_v49 = vmul.f32 %v1714_v48, %v1712_v39 }
 0x276   : > { %v855_v50 = vsel %vm841_vm3, %v852_v49, 0  ;;  %853 = vst.msk [vmem:[%s380_s24] sm:$0xff] %vm841_vm3, %v852_v49 }
 0x277   : > { %v923_v51 = vand.u32 4294901760, %v855_v50 }
 0x279   : > { %v924_v52 = vsub.f32 %v855_v50, %v923_v51  ;;  %1605 = vmatmul.mubr.f32.vlgmr.msra.gmra.mxu1 %v923_v51 }
 0x27a   : > { %1613 = vmatpush3.msra.mxu1 %v888_v42  ;;  %1614 = vmatprep.mubr.msk.f32.mxu1 %vm1952_vm0, %v1951_v0 }
 0x27b   : > { %v925_v53 = vand.u32 4294901760, %v924_v52  ;;  %1622 = vmatprep.subr.mxu1 %v1951_v0 }
 0x27d   : > { %1615 = vmatmul.mubr.f32.vlgmr.msra.gmra.mxu1 %v925_v53  ;;  %v926_v54 = vsub.f32 %v924_v52, %v925_v53 }
 0x27e   : > { %1623 = vmatpush3.msra.mxu1 %v888_v42  ;;  %1624 = vmatprep.mubr.msk.f32.mxu1 %vm1952_vm0, %v1951_v0 }
 0x27f   : > { %v927_v55 = vand.u32 4294901760, %v926_v54 }
 0x281   : > { %1600 = vmatmul.mubr.f32.vlgmr.msra.gmra.mxu0 %v927_v55  ;;  %1625 = vmatmul.mubr.f32.vlgmr.msra.gmra.mxu1 %v923_v51 }
 0x282   : > { %1608 = vmatpush3.msra.mxu0 %v965_v43  ;;  %1609 = vmatprep.mubr.msk.f32.mxu0 %vm1952_vm0, %v1951_v0 }
 0x283   : > { %1617 = vmatprep.subr.mxu0 %v1951_v0 }
 0x285   : > { %1610 = vmatmul.mubr.f32.vlgmr.msra.gmra.mxu0 %v924_v52 }
 0x286   : > { %1618 = vmatpush3.msra.mxu0 %v966_v44  ;;  %1619 = vmatprep.mubr.msk.f32.mxu0 %vm1952_vm0, %v1951_v0 }
 0x289   : > { %1620 = vmatmul.mubr.f32.vlgmr.msra.gmra.mxu0 %v923_v51 }
 0x28a   : > { %1840 = shalt.err (!%p1837_p13)
}
 0x28b   : > { %s1841_s10 = scalar_lea.hbm %s1336_s25, 128  ;;  %s1845_s27 = scalar_lea.hbm %s2273_s5, 256 }
 0x28c   : > { %p1842_p12 = scmp.ne.s32.totalorder %s1336_s25, %s1841_s10  ;;  %p1846_p5 = scmp.lt.s32.totalorder %s1336_s25, %s2273_s5 }
 0x28d   : > { %p1847_p6 = scmp.lt.s32.totalorder %s1845_s27, %s1841_s10 }
 0x28e   : > { %p1843_p1 = pnand %p1842_p12, %p2040_p9 }
 0x28f   : > { %p1848_p8 = por %p1847_p6, %p1846_p5 }
 0x290   : > { %p1844_p2 = pneg %p1843_p1 }
 0x292   : > { %p1849_p0 = pnand %p1848_p8, %p1844_p2 }
 0x294   : > { %1852 = shalt.err (!%p1849_p0)
}
 0x295   : > { %1636 = dma.vmem_to_hbm [thread:$0]  (%p2040_p9), %s1339_s1, 128, %s1336_s25, %s1310_s15  }
 0x296   : > { %s373_s7 = scalar_lea.vmem [#allocation10], %s2138_s9  ;;  %s1322_s16 = scalar_lea.hbm %s2272_s4, %s1539_s30 }
 0x297   : > { %s1324_s17 = sshll.u32 %s373_s7, 4  ;;  %s1305_s25 = scalar_lea.sflag [#allocation4], %s2135_s22  ;;  %s1325_s17 = int_to_ptr.vmem [resolvable:$true] %s1324_s17 }
 0x298   : > { %s1853_s1 = scalar_lea.vmem %s1325_s17, 128  ;;  %s1954_s15 = smov [#allocation10]  }
 0x299   : > { %p1854_p3 = scmp.ne.s32.totalorder %s1325_s17, %s1853_s1  ;;  %s1857_s9 = sshll.u32 %s1954_s15, 4  ;;  %s1858_s9 = int_to_ptr.vmem [resolvable:$false] %s1857_s9 }
 0x29a   : > { %s1859_s28 = scalar_lea.vmem %s1858_s9, 256  ;;  %p1860_p10 = scmp.lt.s32.totalorder %s1325_s17, %s1858_s9 }
 0x29b   : > { %p1855_p4 = pnand %p1854_p3, %p2040_p9  ;;  %p1861_p13 = scmp.lt.s32.totalorder %s1859_s28, %s1853_s1 }
 0x29d   : > { %p1856_p7 = pneg %p1855_p4  ;;  %p1862_p12 = por %p1861_p13, %p1860_p10 }
 0x29f   : > { %p1863_p1 = pnand %p1862_p12, %p1856_p7 }
 0x339   : > { %v1005_v56 = vpop.f32.mrf.mxu1 }
 0x33b   : > { %v1606_v57 = vpop.f32.mrf.mxu1 }
 0x33d   : > { %v1153_v58 = vpop.f32.mrf.mxu1 }
 0x33f   : > { %v1616_v59 = vpop.f32.mrf.mxu1 }
 0x341   : > { %v929_v60 = vpop.f32.mrf.mxu0  ;;  %v1299_v61 = vpop.f32.mrf.mxu1 }
 0x342   : > { %v1006_v0 = vadd.f32 %v1005_v56, %v929_v60 }
 0x343   : > { %v1601_v62 = vpop.f32.mrf.mxu0  ;;  %v1626_v63 = vpop.f32.mrf.mxu1 }
 0x345   : > { %v1079_v1 = vpop.f32.mrf.mxu0 }
 0x346   : > { %v1080_v2 = vadd.f32 %v1079_v1, %v1006_v0 }
 0x347   : > { %v1611_v3 = vpop.f32.mrf.mxu0 }
 0x348   : > { %v1154_v4 = vadd.f32 %v1153_v58, %v1080_v2 }
 0x349   : > { %v1227_v5 = vpop.f32.mrf.mxu0 }
 0x34a   : > { %v1228_v6 = vadd.f32 %v1227_v5, %v1154_v4 }
 0x34b   : > { %v1621_v7 = vpop.f32.mrf.mxu0 }
 0x34c   : > { %v1300_v8 = vadd.f32 %v1299_v61, %v1228_v6 }
 0x34e   : > { %1303 = vst.msk [vmem:[%s373_s7] sm:$0xff] %vm384_vm1, %v1300_v8 }
 0x34f   : > { %1866 = shalt.err (!%p1863_p1)
}
 0x350   : > { %s1867_s21 = scalar_lea.hbm %s1322_s16, 128  ;;  %s1871_s14 = scalar_lea.hbm %s2272_s4, 256 }
 0x351   : > { %p1868_p2 = scmp.ne.s32.totalorder %s1322_s16, %s1867_s21  ;;  %p1872_p8 = scmp.lt.s32.totalorder %s1322_s16, %s2272_s4 }
 0x352   : > { %p1873_p0 = scmp.lt.s32.totalorder %s1871_s14, %s1867_s21 }
 0x353   : > { %p1869_p5 = pnand %p1868_p2, %p2040_p9 }
 0x354   : > { %p1874_p3 = por %p1873_p0, %p1872_p8 }
 0x355   : > { %p1870_p6 = pneg %p1869_p5 }
 0x357   : > { %p1875_p4 = pnand %p1874_p3, %p1870_p6 }
 0x359   : > { %1878 = shalt.err (!%p1875_p4)
}
 0x35a   : > { %1635 = dma.vmem_to_hbm [thread:$0]  (%p2040_p9), %s1325_s17, 128, %s1322_s16, %s1305_s25  }
 0x35b PF: > { %s2292_s10 = sld [smem:[#allocation20_spill]]  ;;  %s1350_s11 = sand.u32 1, %s1925_s18  }
 0x35c   : > { %s1351_s12 = scalar_lea.sflag [#allocation4], %s1350_s11 }
 0x361   : > { %p2293_p7 = scmp.ge.s32.totalorder %s2292_s10, 2 }
 0x363   : > { %p1653_p10 = pnand %p2293_p7, %p2047_p11 }
 0x365   : > { %p1654_p13 = pneg %p1653_p10 }
 0x367   : > { %1916 = dma.done.wait (%p1654_p13), %s1351_s12, 128  }
 0x368   : > { %1918 = vsyncadd (%p1654_p13), %s1351_s12, 4294967168  ;;  %s1360_s27 = scalar_lea.sflag [#allocation12], %s1350_s11 }
 0x369   : > { %1920 = dma.done.wait (%p1654_p13), %s1360_s27, 128  }
 0x36a   : > { %1922 = vsyncadd (%p1654_p13), %s1360_s27, 4294967168  ;;  %s31_s23 = sadd.s32 1, %s2292_s10   ;;  %s2294_s6 = sld [smem:[#allocation18_spill]] }
 0x36b   : > { %p28_p12 = scmp.ge.s32.totalorder %s31_s23, 4   ;;  %s2295_s20 = sld [smem:[#allocation22_spill]] }
 0x36c   : > { %s2296_s21 = sld [smem:[#allocation19_spill]]  ;;  %s2298_s18 = smov %s1929_s19 }
 0x36d   : > { %s2297_s22 = sld [smem:[#allocation21_spill]]  ;;  %30 = sbr.rel (!%p28_p12) target bundleno = 14 (0xe), region = 135 }
 0x370   : > { %s2299_s19 = smov %s2294_s6 }
 0x372   :  { %1365 = vsyncpa [#allocation3], 1 }
 0x373   :  { %1367 = vsyncpa [#allocation3 + $0x1], 1 }
 0x374   :  { %1368 = vsyncpa [#allocation6], 1 }
 0x375   :  { %1370 = vsyncpa [#allocation6 + $0x1], 1 }
 0x376   :  { %1371 = vsyncpa [#allocation9], 1 }
 0x377   :  { %1373 = vsyncpa [#allocation9 + $0x1], 1 }
 0x378   :  { %1374 = vsyncpa [#allocation4], 1 }
 0x379   :  { %1376 = vsyncpa [#allocation4 + $0x1], 1 }
 0x37a   :  { %1377 = vsyncpa [#allocation12], 1 }
 0x37b   :  { %1379 = vsyncpa [#allocation12 + $0x1], 1 }

</bundles_post_ra>
